<compile_context>
chip_gen: v5e
topology: v5e:2x2
jax: 0.10.0
libtpu: 0.0.40
codegen_flags: <defaults>
</compile_context>

<pallas_src>
import math

import jax
import jax.numpy as jnp
from jax.experimental import pallas as pl
from jax.experimental.pallas import tpu as pltpu

_LANE = 128
# Sum of the 5 input block sizes per grid step; pipeline VMEM usage is roughly
# 4x this (double buffering x in+out), kept well under every chip's VMEM.
_BLOCK_BYTES_BUDGET = 5 * 1024 * 1024
_VMEM_LIMIT_BYTES = 48 * 1024 * 1024


def _drop_path_kernel(scale_ref, *refs):
    """Multiply each (TB, TR, 128) tile by its per-sample f32 scale."""
    n = len(refs) // 2
    in_refs, out_refs = refs[:n], refs[n:]
    scale = scale_ref[...]  # (TB, 1, 1) float32: keep_mask * 1/keep_prob
    for x_ref, o_ref in zip(in_refs, out_refs):
        o_ref[...] = (x_ref[...].astype(jnp.float32) * scale).astype(o_ref.dtype)


def _to_slab(x):
    """View (B, ...) as (B, rows, 128); pad the flat axis only if required."""
    b = x.shape[0]
    flat = x.reshape(b, -1)
    f = flat.shape[1]
    pad = (-f) % _LANE
    if pad:
        flat = jnp.pad(flat, ((0, 0), (0, pad)))
    rows = (f + pad) // _LANE
    return flat.reshape(b, rows, _LANE), f, pad


def _sublane(dtype):
    # Sublane packing granularity: 8 for 32-bit, 16 for 16-bit, 32 for 8-bit.
    return 8 * max(1, 4 // jnp.dtype(dtype).itemsize)


def _divisors(n):
    return [d for d in range(1, n + 1) if n % d == 0]


def _choose_tiling(batch, rows_list, dtypes):
    """Pick (TB batch samples, NR row tiles) so blocks fit the VMEM budget."""
    itemsizes = [jnp.dtype(d).itemsize for d in dtypes]
    sublanes = [_sublane(d) for d in dtypes]

    g = rows_list[0]
    for r in rows_list[1:]:
        g = math.gcd(g, r)
    # NR must divide every tensor's row count and leave sublane-aligned tiles
    # (NR == 1 always valid: the tile then equals the full rows dim).
    nr_cands = [
        d for d in _divisors(g)
        if d == 1 or all((r // d) % s == 0 for r, s in zip(rows_list, sublanes))
    ]
    tb_cands = sorted([d for d in _divisors(batch) if d <= 8], reverse=True)

    def block_bytes(tb, nr):
        return tb * sum((r // nr) * _LANE * isz for r, isz in zip(rows_list, itemsizes))

    for tb in tb_cands:           # prefer many samples per step
        for nr in nr_cands:       # prefer big row tiles
            if block_bytes(tb, nr) <= _BLOCK_BYTES_BUDGET:
                return tb, nr
    # Fallback: one sample per step, finest valid row tiling.
    return 1, max(nr_cands)


def drop_path_d8(xs, drop_prob=0.0, training=False, scale_by_keep=True, *, key=None):
    """JAX/Pallas equivalent of the PyTorch drop_path_d8."""
    xs = tuple(xs)
    if drop_prob == 0.0 or not training:
        return xs
    if key is None:
        raise ValueError(
            "drop_path_d8 requires a PRNG `key` when training with drop_prob > 0."
        )

    batch = xs[0].shape[0]
    keep_prob = 1.0 - drop_prob
    inv_keep = (1.0 / keep_prob) if (keep_prob > 0.0 and scale_by_keep) else 1.0

    # Per-sample Bernoulli keep mask folded with 1/keep_prob into one f32 scale.
    keep = jax.random.bernoulli(key, p=keep_prob, shape=(batch,))
    scale = jnp.where(keep, jnp.float32(inv_keep), jnp.float32(0.0)).reshape(batch, 1, 1)

    slabs, flats, pads = [], [], []
    for x in xs:
        s, f, p = _to_slab(x)  # native dtype kept end-to-end
        slabs.append(s)
        flats.append(f)
        pads.append(p)

    rows_list = [s.shape[1] for s in slabs]
    tb, nr = _choose_tiling(batch, rows_list, [s.dtype for s in slabs])
    grid = (batch // tb, nr)

    in_specs = [pl.BlockSpec((tb, 1, 1), lambda bb, rr: (bb, 0, 0))]
    in_specs += [
        pl.BlockSpec((tb, r // nr, _LANE), lambda bb, rr: (bb, rr, 0)) for r in rows_list
    ]
    out_specs = tuple(
        pl.BlockSpec((tb, r // nr, _LANE), lambda bb, rr: (bb, rr, 0)) for r in rows_list
    )
    out_shapes = tuple(jax.ShapeDtypeStruct(s.shape, s.dtype) for s in slabs)

    outs = pl.pallas_call(
        _drop_path_kernel,
        out_shape=out_shapes,
        grid=grid,
        in_specs=in_specs,
        out_specs=out_specs,
        compiler_params=pltpu.CompilerParams(
            dimension_semantics=("parallel", "arbitrary"),
            vmem_limit_bytes=_VMEM_LIMIT_BYTES,
        ),
    )(scale, *slabs)

    results = []
    for o, x, f, p in zip(outs, xs, flats, pads):
        if p:  # only the padded case needs a slice (extra pass); aligned case is a free reshape
            o = o.reshape(batch, -1)[:, :f]
        results.append(o.reshape(x.shape))
    return tuple(results)


class DropPathD8:
    """Drop paths (stochastic depth) per sample for D8 feature tuples."""

    def __init__(self, drop_prob: float = 0.0, scale_by_keep: bool = True):
        self.drop_prob = drop_prob
        self.scale_by_keep = scale_by_keep
        self.training = True

    def __call__(self, xs, *, key=None):
        return drop_path_d8(
            xs, self.drop_prob, self.training, self.scale_by_keep, key=key
        )


if __name__ == "__main__":
    B, N, C = 2, 8, 32
    root = jax.random.PRNGKey(0)
    k0, k1, k2, k3, k4, kmask = jax.random.split(root, 6)

    # --- float32, lane-aligned case (no padding path) ---
    x0 = jax.random.normal(k0, (B, N, C), jnp.float32)
    x1 = jax.random.normal(k1, (B, N, C), jnp.float32)
    x2 = jax.random.normal(k2, (B, N, C), jnp.float32)
    x3 = jax.random.normal(k3, (B, N, C), jnp.float32)
    x4 = jax.random.normal(k4, (B, N, C, 2), jnp.float32)
    xs = (x0, x1, x2, x3, x4)

    drop_prob = 0.5
    module = DropPathD8(drop_prob=drop_prob, scale_by_keep=True)
    outs = jax.block_until_ready(module(xs, key=kmask))

    keep_prob = 1.0 - drop_prob
    keep_ref = jax.random.bernoulli(kmask, p=keep_prob, shape=(B,)).astype(jnp.float32)
    keep_ref = keep_ref / keep_prob
    refs = tuple(x * keep_ref.reshape((B,) + (1,) * (x.ndim - 1)) for x in xs)
    for o, r in zip(outs, refs):
        assert o.shape == r.shape and o.dtype == r.dtype
        assert jnp.allclose(o, r, atol=1e-6, rtol=1e-6)

    # --- bfloat16, non-128-multiple flat size (padding path, native dtype) ---
    C2 = 24
    y0 = jax.random.normal(k0, (B, N, C2), jnp.bfloat16)
    y1 = jax.random.normal(k1, (B, N, C2), jnp.bfloat16)
    y2 = jax.random.normal(k2, (B, N, C2), jnp.bfloat16)
    y3 = jax.random.normal(k3, (B, N, C2), jnp.bfloat16)
    y4 = jax.random.normal(k4, (B, N, C2, 2), jnp.bfloat16)
    ys = (y0, y1, y2, y3, y4)
    outs_b = jax.block_until_ready(module(ys, key=kmask))
    for o, y in zip(outs_b, ys):
        r = (y.astype(jnp.float32)
             * keep_ref.reshape((B,) + (1,) * (y.ndim - 1))).astype(jnp.bfloat16)
        assert o.shape == y.shape and o.dtype == jnp.bfloat16
        assert jnp.allclose(o.astype(jnp.float32), r.astype(jnp.float32),
                            atol=1e-2, rtol=1e-2)

    # --- eval / drop_prob==0 identity path (consistent tuple return) ---
    module.training = False
    outs_eval = module(xs, key=kmask)
    assert isinstance(outs_eval, tuple)
    for o, x in zip(outs_eval, xs):
        assert o is x or bool(jnp.all(o == x))

    print("KERNEL_OK")
</pallas_src>

<mosaic_0001>
module attributes {stable_mosaic.version = 11 : i64} {
  func.func @_drop_path_kernel(%arg0: i32, %arg1: i32, %arg2: memref<2x1x1xf32, #tpu.memory_space<vmem>>, %arg3: memref<2x2x128xf32, #tpu.memory_space<vmem>>, %arg4: memref<2x2x128xf32, #tpu.memory_space<vmem>>, %arg5: memref<2x2x128xf32, #tpu.memory_space<vmem>>, %arg6: memref<2x2x128xf32, #tpu.memory_space<vmem>>, %arg7: memref<2x4x128xf32, #tpu.memory_space<vmem>>, %arg8: memref<2x2x128xf32, #tpu.memory_space<vmem>>, %arg9: memref<2x2x128xf32, #tpu.memory_space<vmem>>, %arg10: memref<2x2x128xf32, #tpu.memory_space<vmem>>, %arg11: memref<2x2x128xf32, #tpu.memory_space<vmem>>, %arg12: memref<2x4x128xf32, #tpu.memory_space<vmem>>) attributes {dimension_semantics = [#tpu.dimension_semantics<parallel>, #tpu.dimension_semantics<arbitrary>], iteration_bounds = array<i64: 1, 1>, scalar_prefetch = 0 : i64, scratch_operands = 0 : i64, tpu.core_type = #tpu.core_type<tc>, window_params = [{transform_indices = @transform_0, window_bounds = array<i64: 2, 1, 1>}, {transform_indices = @transform_1, window_bounds = array<i64: 2, 2, 128>}, {transform_indices = @transform_2, window_bounds = array<i64: 2, 2, 128>}, {transform_indices = @transform_3, window_bounds = array<i64: 2, 2, 128>}, {transform_indices = @transform_4, window_bounds = array<i64: 2, 2, 128>}, {transform_indices = @transform_5, window_bounds = array<i64: 2, 4, 128>}, {transform_indices = @transform_6, window_bounds = array<i64: 2, 2, 128>}, {transform_indices = @transform_7, window_bounds = array<i64: 2, 2, 128>}, {transform_indices = @transform_8, window_bounds = array<i64: 2, 2, 128>}, {transform_indices = @transform_9, window_bounds = array<i64: 2, 2, 128>}, {transform_indices = @transform_10, window_bounds = array<i64: 2, 4, 128>}]} {
    %c0 = arith.constant 0 : index
    %c0_0 = arith.constant 0 : index
    %c0_1 = arith.constant 0 : index
    %0 = vector.load %arg2[%c0, %c0_0, %c0_1] : memref<2x1x1xf32, #tpu.memory_space<vmem>>, vector<2x1x1xf32>
    %c0_2 = arith.constant 0 : index
    %c0_3 = arith.constant 0 : index
    %c0_4 = arith.constant 0 : index
    %1 = vector.load %arg3[%c0_2, %c0_3, %c0_4] : memref<2x2x128xf32, #tpu.memory_space<vmem>>, vector<2x2x128xf32>
    %2 = vector.broadcast %0 : vector<2x1x1xf32> to vector<2x2x128xf32>
    %3 = arith.mulf %1, %2 : vector<2x2x128xf32>
    %c0_5 = arith.constant 0 : index
    %c0_6 = arith.constant 0 : index
    %c0_7 = arith.constant 0 : index
    %4 = vector.load %arg8[%c0_5, %c0_6, %c0_7] : memref<2x2x128xf32, #tpu.memory_space<vmem>>, vector<2x2x128xf32>
    tpu.vector_store %arg8[%c0_5, %c0_6, %c0_7], %3 {strides = array<i32>} : memref<2x2x128xf32, #tpu.memory_space<vmem>>, vector<2x2x128xf32>,
    %c0_8 = arith.constant 0 : index
    %c0_9 = arith.constant 0 : index
    %c0_10 = arith.constant 0 : index
    %5 = vector.load %arg4[%c0_8, %c0_9, %c0_10] : memref<2x2x128xf32, #tpu.memory_space<vmem>>, vector<2x2x128xf32>
    %6 = vector.broadcast %0 : vector<2x1x1xf32> to vector<2x2x128xf32>
    %7 = arith.mulf %5, %6 : vector<2x2x128xf32>
    %c0_11 = arith.constant 0 : index
    %c0_12 = arith.constant 0 : index
    %c0_13 = arith.constant 0 : index
    %8 = vector.load %arg9[%c0_11, %c0_12, %c0_13] : memref<2x2x128xf32, #tpu.memory_space<vmem>>, vector<2x2x128xf32>
    tpu.vector_store %arg9[%c0_11, %c0_12, %c0_13], %7 {strides = array<i32>} : memref<2x2x128xf32, #tpu.memory_space<vmem>>, vector<2x2x128xf32>,
    %c0_14 = arith.constant 0 : index
    %c0_15 = arith.constant 0 : index
    %c0_16 = arith.constant 0 : index
    %9 = vector.load %arg5[%c0_14, %c0_15, %c0_16] : memref<2x2x128xf32, #tpu.memory_space<vmem>>, vector<2x2x128xf32>
    %10 = vector.broadcast %0 : vector<2x1x1xf32> to vector<2x2x128xf32>
    %11 = arith.mulf %9, %10 : vector<2x2x128xf32>
    %c0_17 = arith.constant 0 : index
    %c0_18 = arith.constant 0 : index
    %c0_19 = arith.constant 0 : index
    %12 = vector.load %arg10[%c0_17, %c0_18, %c0_19] : memref<2x2x128xf32, #tpu.memory_space<vmem>>, vector<2x2x128xf32>
    tpu.vector_store %arg10[%c0_17, %c0_18, %c0_19], %11 {strides = array<i32>} : memref<2x2x128xf32, #tpu.memory_space<vmem>>, vector<2x2x128xf32>,
    %c0_20 = arith.constant 0 : index
    %c0_21 = arith.constant 0 : index
    %c0_22 = arith.constant 0 : index
    %13 = vector.load %arg6[%c0_20, %c0_21, %c0_22] : memref<2x2x128xf32, #tpu.memory_space<vmem>>, vector<2x2x128xf32>
    %14 = vector.broadcast %0 : vector<2x1x1xf32> to vector<2x2x128xf32>
    %15 = arith.mulf %13, %14 : vector<2x2x128xf32>
    %c0_23 = arith.constant 0 : index
    %c0_24 = arith.constant 0 : index
    %c0_25 = arith.constant 0 : index
    %16 = vector.load %arg11[%c0_23, %c0_24, %c0_25] : memref<2x2x128xf32, #tpu.memory_space<vmem>>, vector<2x2x128xf32>
    tpu.vector_store %arg11[%c0_23, %c0_24, %c0_25], %15 {strides = array<i32>} : memref<2x2x128xf32, #tpu.memory_space<vmem>>, vector<2x2x128xf32>,
    %c0_26 = arith.constant 0 : index
    %c0_27 = arith.constant 0 : index
    %c0_28 = arith.constant 0 : index
    %17 = vector.load %arg7[%c0_26, %c0_27, %c0_28] : memref<2x4x128xf32, #tpu.memory_space<vmem>>, vector<2x4x128xf32>
    %18 = vector.broadcast %0 : vector<2x1x1xf32> to vector<2x4x128xf32>
    %19 = arith.mulf %17, %18 : vector<2x4x128xf32>
    %c0_29 = arith.constant 0 : index
    %c0_30 = arith.constant 0 : index
    %c0_31 = arith.constant 0 : index
    %20 = vector.load %arg12[%c0_29, %c0_30, %c0_31] : memref<2x4x128xf32, #tpu.memory_space<vmem>>, vector<2x4x128xf32>
    tpu.vector_store %arg12[%c0_29, %c0_30, %c0_31], %19 {strides = array<i32>} : memref<2x4x128xf32, #tpu.memory_space<vmem>>, vector<2x4x128xf32>,
    return
  }
  func.func @transform_0(%arg0: i32, %arg1: i32) -> (i32, i32, i32) {
    %c0_i32 = arith.constant 0 : i32
    %c0_i32_0 = arith.constant 0 : i32
    %c0_i32_1 = arith.constant 0 : i32
    return %arg0, %c0_i32, %c0_i32_0 : i32, i32, i32
  }
  func.func @transform_1(%arg0: i32, %arg1: i32) -> (i32, i32, i32) {
    %c0_i32 = arith.constant 0 : i32
    %c0_i32_0 = arith.constant 0 : i32
    return %arg0, %arg1, %c0_i32 : i32, i32, i32
  }
  func.func @transform_2(%arg0: i32, %arg1: i32) -> (i32, i32, i32) {
    %c0_i32 = arith.constant 0 : i32
    %c0_i32_0 = arith.constant 0 : i32
    return %arg0, %arg1, %c0_i32 : i32, i32, i32
  }
  func.func @transform_3(%arg0: i32, %arg1: i32) -> (i32, i32, i32) {
    %c0_i32 = arith.constant 0 : i32
    %c0_i32_0 = arith.constant 0 : i32
    return %arg0, %arg1, %c0_i32 : i32, i32, i32
  }
  func.func @transform_4(%arg0: i32, %arg1: i32) -> (i32, i32, i32) {
    %c0_i32 = arith.constant 0 : i32
    %c0_i32_0 = arith.constant 0 : i32
    return %arg0, %arg1, %c0_i32 : i32, i32, i32
  }
  func.func @transform_5(%arg0: i32, %arg1: i32) -> (i32, i32, i32) {
    %c0_i32 = arith.constant 0 : i32
    %c0_i32_0 = arith.constant 0 : i32
    return %arg0, %arg1, %c0_i32 : i32, i32, i32
  }
  func.func @transform_6(%arg0: i32, %arg1: i32) -> (i32, i32, i32) {
    %c0_i32 = arith.constant 0 : i32
    %c0_i32_0 = arith.constant 0 : i32
    return %arg0, %arg1, %c0_i32 : i32, i32, i32
  }
  func.func @transform_7(%arg0: i32, %arg1: i32) -> (i32, i32, i32) {
    %c0_i32 = arith.constant 0 : i32
    %c0_i32_0 = arith.constant 0 : i32
    return %arg0, %arg1, %c0_i32 : i32, i32, i32
  }
  func.func @transform_8(%arg0: i32, %arg1: i32) -> (i32, i32, i32) {
    %c0_i32 = arith.constant 0 : i32
    %c0_i32_0 = arith.constant 0 : i32
    return %arg0, %arg1, %c0_i32 : i32, i32, i32
  }
  func.func @transform_9(%arg0: i32, %arg1: i32) -> (i32, i32, i32) {
    %c0_i32 = arith.constant 0 : i32
    %c0_i32_0 = arith.constant 0 : i32
    return %arg0, %arg1, %c0_i32 : i32, i32, i32
  }
  func.func @transform_10(%arg0: i32, %arg1: i32) -> (i32, i32, i32) {
    %c0_i32 = arith.constant 0 : i32
    %c0_i32_0 = arith.constant 0 : i32
    return %arg0, %arg1, %c0_i32 : i32, i32, i32
  }
}

</mosaic_0001>

<bundles_post_ra>
// kernel: tpu_custom_call.1
= control target key start
LH: loop header
LB: loop body
LE: loop exit
PB: predicated region body
PF: predicated region fallthrough
CT: control target
= control target key end

     0   :  { %16 = vsyncpa [#allocation3], 0  ;;  %s625_s0 = inlined_call_operand.vmem [shape: f32[2,1,1], index: 0, kind: input, shape index: {}]   ;;  %s626_s1 = inlined_call_operand.hbm [shape: f32[2,2,128], index: 1, kind: input, shape index: {}]   ;;  %s627_s2 = inlined_call_operand.vmem [shape: f32[2,2,128], index: 2, kind: input, shape index: {}]   ;;  %s628_s3 = inlined_call_operand.hbm [shape: f32[2,2,128], index: 3, kind: input, shape index: {}]   ;;  %s629_s4 = inlined_call_operand.hbm [shape: f32[2,2,128], index: 4, kind: input, shape index: {}]   ;;  %s630_s5 = inlined_call_operand.hbm [shape: f32[2,4,128], index: 5, kind: input, shape index: {}]   ;;  %s631_s6 = inlined_call_operand.hbm [shape: f32[2,2,128], index: 6, kind: output, shape index: {0}]   ;;  %s632_s7 = inlined_call_operand.hbm [shape: f32[2,2,128], index: 7, kind: output, shape index: {1}]   ;;  %s633_s8 = inlined_call_operand.hbm [shape: f32[2,2,128], index: 8, kind: output, shape index: {2}]   ;;  %s634_s9 = inlined_call_operand.hbm [shape: f32[2,2,128], index: 9, kind: output, shape index: {3}]   ;;  %s635_s10 = inlined_call_operand.hbm [shape: f32[2,4,128], index: 10, kind: output, shape index: {4}]  }
   0x1   :  { %17 = vsyncpa [#allocation6], 0 }
   0x2   :  { %18 = vsyncpa [#allocation9], 0 }
   0x3   :  { %19 = vsyncpa [#allocation4], 0 }
   0x4   :  { %20 = vsyncpa [#allocation12], 0 }
   0x5   :  { %21 = vsyncpa [#allocation15], 0  ;;  %s43_s15 = sshll.u32 %s628_s3, 4  ;;  %s474_s16 = smov [#allocation5]   ;;  %s44_s15 = int_to_ptr.hbm [resolvable:$true] %s43_s15 }
   0x6   :  { %s45_s17 = sshll.u32 %s474_s16, 4  ;;  %s28_s20 = sshll.u32 %s626_s1, 4  ;;  %s46_s17 = int_to_ptr.vmem [resolvable:$true] %s45_s17  ;;  %s29_s20 = int_to_ptr.hbm [resolvable:$true] %s28_s20 }
   0x7   :  { %s475_s21 = smov 32   ;;  %s476_s22 = smov 2  }
   0x8   :  { %51 = dma.hbm_to_vmem [thread:$0]  %s44_s15, 64, %s46_s17, [#allocation6], %s475_s21, %s475_s21, %s476_s22  }
   0x9   :  { %s477_s23 = smov [#allocation2]   ;;  %s56_s3 = sshll.u32 %s629_s4, 4  ;;  %s57_s3 = int_to_ptr.hbm [resolvable:$true] %s56_s3 }
   0xa   :  { %s30_s24 = sshll.u32 %s477_s23, 4  ;;  %s69_s28 = sshll.u32 %s630_s5, 4  ;;  %s31_s24 = int_to_ptr.vmem [resolvable:$true] %s30_s24  ;;  %s70_s28 = int_to_ptr.hbm [resolvable:$true] %s69_s28 }
   0xb   :  { %36 = dma.hbm_to_vmem [thread:$0]  %s29_s20, 64, %s31_s24, [#allocation3], %s475_s21, %s475_s21, %s476_s22  }
   0xc   :  { %s478_s29 = smov [#allocation7]   ;;  %s479_s11 = smov [#allocation8]  }
   0xd   :  { %s58_s30 = sshll.u32 %s478_s29, 4  ;;  %s71_s4 = sshll.u32 %s479_s11, 4  ;;  %s59_s30 = int_to_ptr.vmem [resolvable:$true] %s58_s30  ;;  %s72_s4 = int_to_ptr.vmem [resolvable:$true] %s71_s4 }
   0xe   :  { %64 = dma.hbm_to_vmem [thread:$0]  %s57_s3, 64, %s59_s30, [#allocation6], %s475_s21, %s475_s21, %s476_s22  }
   0xf   :  { %s480_s12 = smov 64   ;;  %s481_s13 = smov 4  }
  0x10   :  { %77 = dma.hbm_to_vmem [thread:$0]  %s70_s28, 128, %s72_s4, [#allocation9], %s480_s12, %s480_s12, %s481_s13  }
  0x11   :  { %462 = dma.done.wait [#allocation3], 64  }
  0x12   :  { %463 = vsyncadd [#allocation3], 4294967232 }
  0x13   :  { %464 = dma.done.wait [#allocation6], 128  }
  0x14   :  { %465 = vsyncadd [#allocation6], 4294967168 }
  0x15   :  { %466 = dma.done.wait [#allocation9], 128  }
  0x16   :  { %467 = vsyncadd [#allocation9], 4294967168  ;;  %v482_v0 = vmov 0   ;;  %v244_v1 = vld [vmem:[%s625_s0] ss:$0 sm:$0xff]  ;;  %s157_s23 = sshll.u32 %s632_s7, 4  ;;  %s587_s23 = int_to_ptr.hbm [resolvable:$true] %s157_s23 }
  0x17   :  { %243 = vset.pattern.permute.xlu0 %v482_v0  ;;  %v245_v2 = vld [vmem:[%s625_s0 + $0x1] ss:$0 sm:$0xff]  ;;  %v120_v3 = vld [vmem:[#allocation5] sm:$0x3]  ;;  %v132_v4 = vld [vmem:[#allocation8] sm:$0xf] }
  0x18   :  { %103 = vperm.xlu0 %243, %v244_v1   ;;  %v114_v5 = vld [vmem:[%s627_s2] sm:$0x3]  ;;  %v126_v6 = vld [vmem:[#allocation7] sm:$0x3]  ;;  %s483_s0 = smov [#allocation11]   ;;  %s484_s25 = smov [#allocation14]  }
  0x19   :  { %v96_v8 = vld [vmem:[#allocation2] sm:$0x3]  ;;  %s579_s24 = sshll.u32 %s483_s0, 4  ;;  %s581_s26 = sshll.u32 %s484_s25, 4  ;;  %v97_v14 = vld [vmem:[#allocation2 + $0x2] sm:$0x3]  ;;  %s156_s24 = int_to_ptr.vmem [resolvable:$true] %s579_s24  ;;  %s182_s26 = int_to_ptr.vmem [resolvable:$true] %s581_s26 }
  0x1a   :  { %s183_s27 = sshll.u32 %s634_s9, 4  ;;  %v121_v15 = vld [vmem:[#allocation5 + $0x2] sm:$0x3]  ;;  %v115_v16 = vld [vmem:[%s627_s2 + $0x2] sm:$0x3]  ;;  %s485_s29 = smov [#allocation10]   ;;  %s593_s27 = int_to_ptr.hbm [resolvable:$true] %s183_s27 }
  0x1b   :  { %v133_v17 = vld [vmem:[#allocation8 + $0x4] sm:$0xf]  ;;  %v127_v18 = vld [vmem:[#allocation7 + $0x2] sm:$0x3]  ;;  %s142_s9 = sshll.u32 %s485_s29, 4  ;;  %s144_s4 = sshll.u32 %s631_s6, 4  ;;  %s143_s9 = int_to_ptr.vmem [resolvable:$true] %s142_s9  ;;  %s145_s4 = int_to_ptr.hbm [resolvable:$true] %s144_s4 }
  0x1c   :  { %s486_s5 = smov [#allocation13]   ;;  %s170_s2 = sshll.u32 %s633_s8, 4  ;;  %s171_s2 = int_to_ptr.hbm [resolvable:$true] %s170_s2 }
  0x1d   :  { %s168_s14 = sshll.u32 %s486_s5, 4  ;;  %s487_s17 = smov [#allocation16]   ;;  %s169_s14 = int_to_ptr.vmem [resolvable:$true] %s168_s14 }
  0x1e   :  { %s194_s18 = sshll.u32 %s487_s17, 4  ;;  %s196_s6 = sshll.u32 %s635_s10, 4  ;;  %s195_s18 = int_to_ptr.vmem [resolvable:$true] %s194_s18  ;;  %s197_s6 = int_to_ptr.hbm [resolvable:$true] %s196_s6 }
  0x20   :  { %107 = vperm.xlu0 %243, %v245_v2  }
  0x8a   :  { %v104_v7 = vpop.permute.xlu0 %103 }
  0x8b   :  { %v122_v9 = vmul.f32 %v120_v3, %v104_v7  ;;  %v134_v10 = vmul.f32 %v132_v4, %v104_v7  ;;  %v116_v11 = vmul.f32 %v114_v5, %v104_v7  ;;  %v128_v12 = vmul.f32 %v126_v6, %v104_v7 }
  0x8c   :  { %v110_v13 = vmul.f32 %v104_v7, %v96_v8 }
  0x8d   :  { %124 = vst [vmem:[#allocation13] sm:$0x3] %v122_v9 }
  0x8e   :  { %136 = vst [vmem:[#allocation16] sm:$0xf] %v134_v10 }
  0x8f   :  { %118 = vst [vmem:[#allocation11] sm:$0x3] %v116_v11 }
  0x90   :  { %130 = vst [vmem:[#allocation14] sm:$0x3] %v128_v12 }
  0x91   :  { %112 = vst [vmem:[#allocation10] sm:$0x3] %v110_v13 }
  0x92   :  { %v108_v19 = vpop.permute.xlu0 %107 }
  0x93   :  { %v111_v20 = vmul.f32 %v108_v19, %v97_v14  ;;  %v123_v21 = vmul.f32 %v121_v15, %v108_v19  ;;  %v117_v22 = vmul.f32 %v115_v16, %v108_v19  ;;  %v135_v23 = vmul.f32 %v133_v17, %v108_v19 }
  0x94   :  { %v129_v24 = vmul.f32 %v127_v18, %v108_v19 }
  0x95   :  { %125 = vst [vmem:[#allocation13 + $0x2] sm:$0x3] %v123_v21 }
  0x96   :  { %137 = vst [vmem:[#allocation16 + $0x4] sm:$0xf] %v135_v23 }
  0x97   :  { %113 = vst [vmem:[#allocation10 + $0x2] sm:$0x3] %v111_v20 }
  0x98   :  { %119 = vst [vmem:[#allocation11 + $0x2] sm:$0x3] %v117_v22  ;;  %150 = dma.vmem_to_hbm [thread:$0]  %s143_s9, 64, %s145_s4, [#allocation4], %s475_s21, %s475_s21, %s476_s22  }
  0x99   :  { %131 = vst [vmem:[#allocation14 + $0x2] sm:$0x3] %v129_v24  ;;  %163 = dma.vmem_to_hbm [thread:$0]  %s156_s24, 64, %s587_s23, [#allocation12], %s475_s21, %s475_s21, %s476_s22  }
  0x9a   :  { %189 = dma.vmem_to_hbm [thread:$0]  %s182_s26, 64, %s593_s27, [#allocation15], %s475_s21, %s475_s21, %s476_s22  }
  0x9b   :  { %176 = dma.vmem_to_hbm [thread:$0]  %s169_s14, 64, %s171_s2, [#allocation12], %s475_s21, %s475_s21, %s476_s22  }
  0x9c   :  { %202 = dma.vmem_to_hbm [thread:$0]  %s195_s18, 128, %s197_s6, [#allocation15], %s480_s12, %s480_s12, %s481_s13  }
  0x9d   :  { %468 = dma.done.wait [#allocation4], 64  }
  0x9e   :  { %469 = vsyncadd [#allocation4], 4294967232 }
  0x9f   :  { %470 = dma.done.wait [#allocation12], 128  }
  0xa0   :  { %471 = vsyncadd [#allocation12], 4294967168 }
  0xa1   :  { %472 = dma.done.wait [#allocation15], 192  }
  0xa2   :  { %473 = vsyncadd [#allocation15], 4294967104 }
  0xa3   :  { %223 = vsyncpa [#allocation3], 1 }
  0xa4   :  { %224 = vsyncpa [#allocation6], 1 }
  0xa5   :  { %225 = vsyncpa [#allocation9], 1 }
  0xa6   :  { %226 = vsyncpa [#allocation4], 1 }
  0xa7   :  { %227 = vsyncpa [#allocation12], 1 }
  0xa8   :  { %228 = vsyncpa [#allocation15], 1 }

</bundles_post_ra>
